<compile_context>
chip_gen: v7x
topology: tpu7x:2x2x1
jax: 0.10.0
libtpu: 0.0.40
codegen_flags: <defaults>
</compile_context>

<pallas_src>
import functools

import jax
import jax.numpy as jnp
from jax.experimental import pallas as pl
from jax.experimental.pallas import tpu as pltpu

_LANE = 128


def _ceil_div(a, b):
    return -(-a // b)


def _vmem_capacity_bytes():
    """Physical VMEM per TensorCore; conservative (v7x) fallback."""
    try:
        return int(pltpu.get_tpu_info().vmem_capacity_bytes)
    except Exception:
        return 64 << 20


def _channel_shuffle_kernel(x_ref, o_ref, *, groups, cg):
    # x_ref / o_ref: (bn, C, hw_t) VMEM tiles; channels on sublanes, spatial on lanes.
    x = x_ref[...]
    bn, c, hw_t = x.shape
    y = x.reshape(bn, groups, cg, hw_t)   # [bn, g, C/g, hw]
    y = jnp.swapaxes(y, 1, 2)             # [bn, C/g, g, hw]  (VMEM-local sublane shuffle)
    o_ref[...] = y.reshape(bn, c, hw_t)   # row j*g + i == input row i*cg + j


def channel_shuffle(x, groups, *, max_block_bytes=None):
    """Channel shuffle: [N,C,H,W] -> [N,g,C/g,H,W] -> [N,C/g,g,H,W] -> [N,C,H,W]."""
    N, C, H, W = x.shape
    g = groups
    assert C % g == 0, f"Incompatible group size {g} for input channel {C}"
    cg = C // g
    hw = H * W
    itemsize = jnp.dtype(x.dtype).itemsize

    vmem_cap = _vmem_capacity_bytes()
    big_vmem = vmem_cap >= (100 << 20)           # v5e/v6e (128 MiB) vs v7x (64 MiB)
    if max_block_bytes is None:
        max_block_bytes = (14 << 20) if big_vmem else (6 << 20)
    hard_cap = (96 << 20) if big_vmem else (48 << 20)

    # Free metadata reshape; no padding, no extra HBM traffic.
    x_flat = x.reshape(N, C, hw)

    # ---- Spatial tiling: full hw if it fits (exempt from the 128-lane rule),
    # otherwise balanced multiples of 128 lanes; a partial last block is masked
    # by Pallas (only edge vregs take masked stores, interior stays lane-dense).
    if C * hw * itemsize <= max_block_bytes:
        hw_t, n_hw = hw, 1
    else:
        max_hw_t = max(_LANE, (max_block_bytes // (C * itemsize)) // _LANE * _LANE)
        n_hw = _ceil_div(hw, max_hw_t)
        hw_t = _ceil_div(_ceil_div(hw, n_hw), _LANE) * _LANE
        hw_t = min(hw_t, max_hw_t)
        n_hw = _ceil_div(hw, hw_t)

    # ---- Batch fusion: pack several batch elements per block when one batch
    # slab is small; keep >= 2 grid steps so a 2-TC chip isn't half idle.
    bn = 1
    if n_hw == 1:
        per_batch = C * hw_t * itemsize
        bn_cap = max(1, max_block_bytes // per_batch)
        if N > 1:
            bn_cap = min(bn_cap, max(1, N // 2))
        for d in range(min(N, int(bn_cap)), 0, -1):
            if N % d == 0:
                bn = d
                break
    n_nb = N // bn

    # Single-step grid? split the spatial axis so both TensorCores get work.
    if n_nb * n_hw == 1 and hw >= 2 * _LANE:
        hw_t = _ceil_div(_ceil_div(hw, 2), _LANE) * _LANE
        n_hw = _ceil_div(hw, hw_t)

    block_bytes = bn * C * hw_t * itemsize
    # Honest VMEM accounting: double-buffered input + output (4x) plus the
    # block-sized temporary materialized by the in-kernel shuffle, plus slack.
    needed = 6 * block_bytes + (4 << 20)
    vmem_limit = int(min(max(needed, 16 << 20), hard_cap))
    if needed > hard_cap:
        # Pathologically wide-channel corner case: allow up to ~90% of physical VMEM.
        vmem_limit = int(min(needed, int(vmem_cap * 0.9)))

    kernel = functools.partial(_channel_shuffle_kernel, groups=g, cg=cg)

    out_flat = pl.pallas_call(
        kernel,
        out_shape=jax.ShapeDtypeStruct((N, C, hw), x.dtype),
        grid_spec=pltpu.PrefetchScalarGridSpec(
            num_scalar_prefetch=0,
            grid=(n_nb, n_hw),
            # Channels fill sublanes, spatial fills lanes; bn batches per block.
            in_specs=[pl.BlockSpec((bn, C, hw_t), lambda nb, h: (nb, 0, h))],
            out_specs=pl.BlockSpec((bn, C, hw_t), lambda nb, h: (nb, 0, h)),
        ),
        compiler_params=pltpu.CompilerParams(
            # Pure permutation: no reduction axis -> both grid axes parallel.
            dimension_semantics=("parallel", "parallel"),
            vmem_limit_bytes=vmem_limit,
        ),
    )(x_flat)

    # Free metadata reshape back to NCHW.
    return out_flat.reshape(N, C, H, W)


def channel_shuffle_ref(x, groups):
    """Plain-JAX reference matching the PyTorch forward exactly."""
    N, C, H, W = x.shape
    g = groups
    return (
        x.reshape(N, g, C // g, H, W)
        .transpose(0, 2, 1, 3, 4)
        .reshape(N, C, H, W)
    )


if __name__ == "__main__":
    key = jax.random.PRNGKey(0)
    keys = jax.random.split(key, 4)

    # 1) Main test (shapes consistent with the module: C % groups == 0).
    N, C, H, W, groups = 2, 8, 16, 16, 4
    x = jax.random.normal(keys[0], (N, C, H, W), dtype=jnp.float32)
    out = jax.block_until_ready(channel_shuffle(x, groups))
    ref = channel_shuffle_ref(x, groups)
    assert out.shape == (N, C, H, W) and out.dtype == x.dtype
    assert jnp.array_equal(out, ref), "mismatch (main case)"

    # 2) Spatial size not a multiple of 128 (full-hw block, no padding anywhere).
    x2 = jax.random.normal(keys[1], (2, 16, 7, 9), dtype=jnp.float32)
    out2 = jax.block_until_ready(channel_shuffle(x2, 4))
    assert jnp.array_equal(out2, channel_shuffle_ref(x2, 4)), "mismatch (hw=63 case)"

    # 3) Forced spatial tiling with a masked partial last block (hw=200, hw_t=128).
    x3 = jax.random.normal(keys[2], (2, 8, 10, 20), dtype=jnp.float32)
    out3 = jax.block_until_ready(channel_shuffle(x3, 2, max_block_bytes=4096))
    assert jnp.array_equal(out3, channel_shuffle_ref(x3, 2)), "mismatch (partial block)"

    # 4) Batch-fused blocks (bn > 1).
    x4 = jax.random.normal(keys[3], (4, 8, 8, 16), dtype=jnp.float32)
    out4 = jax.block_until_ready(channel_shuffle(x4, 4))
    assert jnp.array_equal(out4, channel_shuffle_ref(x4, 4)), "mismatch (batch-fused)"

    print("KERNEL_OK")
</pallas_src>

<mosaic_0001>
module attributes {stable_mosaic.version = 11 : i64} {
  func.func @_channel_shuffle_kernel(%arg0: i32, %arg1: i32, %arg2: memref<1x8x256xf32, #tpu.memory_space<vmem>>, %arg3: memref<1x8x256xf32, #tpu.memory_space<vmem>>) attributes {dimension_semantics = [#tpu.dimension_semantics<parallel>, #tpu.dimension_semantics<parallel>], iteration_bounds = array<i64: 2, 1>, scalar_prefetch = 0 : i64, scratch_operands = 0 : i64, tpu.core_type = #tpu.core_type<tc>, window_params = [{transform_indices = @transform_0, window_bounds = array<i64: 1, 8, 256>}, {transform_indices = @transform_1, window_bounds = array<i64: 1, 8, 256>}]} {
    %c0 = arith.constant 0 : index
    %c0_0 = arith.constant 0 : index
    %c0_1 = arith.constant 0 : index
    %0 = vector.load %arg2[%c0, %c0_0, %c0_1] : memref<1x8x256xf32, #tpu.memory_space<vmem>>, vector<1x8x256xf32>
    %1 = vector.shape_cast %0 : vector<1x8x256xf32> to vector<1x4x2x256xf32>
    %2 = tpu.transpose %1, [0, 2, 1, 3] : vector<1x4x2x256xf32> -> vector<1x2x4x256xf32>
    %3 = vector.shape_cast %2 : vector<1x2x4x256xf32> to vector<1x8x256xf32>
    %c0_2 = arith.constant 0 : index
    %c0_3 = arith.constant 0 : index
    %c0_4 = arith.constant 0 : index
    %4 = vector.load %arg3[%c0_2, %c0_3, %c0_4] : memref<1x8x256xf32, #tpu.memory_space<vmem>>, vector<1x8x256xf32>
    tpu.vector_store %arg3[%c0_2, %c0_3, %c0_4], %3 {strides = array<i32>} : memref<1x8x256xf32, #tpu.memory_space<vmem>>, vector<1x8x256xf32>,
    return
  }
  func.func @transform_0(%arg0: i32, %arg1: i32) -> (i32, i32, i32) {
    %c0_i32 = arith.constant 0 : i32
    %c0_i32_0 = arith.constant 0 : i32
    return %arg0, %c0_i32, %arg1 : i32, i32, i32
  }
  func.func @transform_1(%arg0: i32, %arg1: i32) -> (i32, i32, i32) {
    %c0_i32 = arith.constant 0 : i32
    %c0_i32_0 = arith.constant 0 : i32
    return %arg0, %c0_i32, %arg1 : i32, i32, i32
  }
}

</mosaic_0001>

<bundles_post_ra>
// kernel: tpu_custom_call.1
= control target key start
LH: loop header
LB: loop body
LE: loop exit
PB: predicated region body
PF: predicated region fallthrough
CT: control target
= control target key end

     0   :  { %6 = vsyncpa [#allocation3], 0  ;;  %s709_s0 = inlined_call_operand.hbm [shape: f32[2,8,256], index: 0, kind: input, shape index: {}]   ;;  %s710_s1 = inlined_call_operand.hbm [shape: f32[2,8,256], index: 1, kind: output, shape index: {}]  }
   0x1   :  { %8 = vsyncpa [#allocation3 + $0x1], 0 }
   0x2   :  { %9 = vsyncpa [#allocation4], 0 }
   0x3   :  { %11 = vsyncpa [#allocation4 + $0x1], 0  ;;  %s537_s6 = smov 0   ;;  %s539_s7 = smov 0  }
   0x4   :  { %s541_s8 = smov 0   ;;  %s543_s9 = smov 0  }
   0x5   :  { %s545_s10 = smov 0   ;;  %s547_s11 = smov 0  }
   0x6 LB: > { %s324_s12 = sadd.s32 4294967295, %s521_s11   ;;  %s325_s13 = sadd.s32 4294967294, %s521_s11   ;;  %s521_s11 = sphi %s547_s11, %s17_s11   ;;  %s517_s10 = sphi %s545_s10, %s726_s10   ;;  %s513_s9 = sphi %s543_s9, %s725_s9   ;;  %s509_s8 = sphi %s541_s8, %s724_s8   ;;  %s505_s7 = sphi %s539_s7, %s723_s7   ;;  %s501_s6 = sphi %s537_s6, %s722_s6  }
   0x7   : > { %s29_s14 = sadd.s32 1, %s517_s10  ;;  %s38_s15 = sadd.s32 1, %s509_s8 }
   0x8   : > { %p31_p0 = scmp.ge.s32.totalorder %s29_s14, 2  ;;  %p45_p1 = scmp.ne.s32.totalorder %s509_s8, %s505_s7 }
   0x9   : > { %p46_p2 = scmp.eq.s32.totalorder %s521_s11, 0  ;;  %p51_p3 = scmp.ne.s32.totalorder %s505_s7, %s501_s6 }
   0xa   : > { %s728_s14 = smov (%p31_p0, %s29_s14), 0  ;;  %p52_p5 = scmp.eq.s32.totalorder %s324_s12, 0 }
   0xb   : > { %p578_p4 = por %p46_p2, %p45_p1  ;;  %s33_s17 = ssub.s32 %s517_s10, %s728_s14 }
   0xc   : > { %p77_p6 = scmp.eq.s32.totalorder %s324_s12, 1  ;;  %p36_p7 = scmp.eq.s32.totalorder %s33_s17, 0 }
   0xd   : > { %p584_p8 = por %p52_p5, %p51_p3  ;;  %p83_p10 = scmp.eq.s32.totalorder %s325_s13, 1 }
   0xe   : > { %p588_p9 = por %p77_p6, %p45_p1  ;;  %p354_p13 = scmp.lt.s32.totalorder %s521_s11, 2 }
   0xf   : > { %s593_s20 = scalar_select %p36_p7, %s509_s8, %s38_s15  }
  0x10   : > { %s714_s19 = scalar_select %p588_p9, 1, 0 }
  0x11   : > { %p595_p11 = por %p83_p10, %p51_p3  ;;  %s103_s22 = sand.u32 1, %s509_s8  }
  0x12   : > { %s328_s23 = sshll.u32 %s103_s22, 4  ;;  %s340_s24 = sshll.u32 %s517_s10, 8 }
  0x13   : > { %s715_s21 = scalar_select %p595_p11, 1, 0 }
  0x14   : > { %s606_s27 = scalar_lea.hbm %s709_s0, %s340_s24  ;;  %s107_s28 = scalar_lea.vmem [#allocation2], %s328_s23 }
  0x15   : > { %s117_s29 = sshll.u32 %s107_s28, 4  ;;  %p612_p0 = pnand %p354_p13, %p578_p4  ;;  %s608_s29 = int_to_ptr.vmem [resolvable:$true] %s117_s29 }
  0x16   : > { %s104_s2 = scalar_lea.sflag [#allocation3], %s103_s22  ;;  %s409_s3 = scalar_lea.hbm %s606_s27, 256 }
  0x17   : > { %p410_p3 = scmp.ne.s32.totalorder %s606_s27, %s409_s3  ;;  %p411_p5 = pneg %p612_p0 }
  0x18   : > { %s414_s12 = scalar_lea.hbm %s709_s0, 512  ;;  %p415_p4 = scmp.lt.u32.totalorder %s606_s27, %s709_s0 }
  0x19   : > { %p412_p6 = pnand %p411_p5, %p410_p3  ;;  %p416_p10 = scmp.lt.u32.totalorder %s414_s12, %s409_s3 }
  0x1a   : > { %p418_p12 = scmp.lt.u32.totalorder %s409_s3, %s606_s27 }
  0x1b   : > { %p413_p7 = pneg %p412_p6  ;;  %p417_p13 = por %p416_p10, %p415_p4 }
  0x1d   : > { %p419_p1 = por %p418_p12, %p417_p13 }
  0x1f   : > { %p420_p2 = pnand %p419_p1, %p413_p7 }
  0x21   : > { %423 = shalt.err (!%p420_p2)
}
  0x22   : > { %s424_s16 = scalar_lea.vmem %s608_s29, 256  ;;  %s523_s17 = smov [#allocation2]  }
  0x23   : > { %p425_p3 = scmp.ne.s32.totalorder %s608_s29, %s424_s16  ;;  %s429_s22 = sshll.u32 %s523_s17, 4  ;;  %s430_s22 = int_to_ptr.vmem [resolvable:$false] %s429_s22 }
  0x24   : > { %s431_s23 = scalar_lea.vmem %s430_s22, 512  ;;  %p432_p9 = scmp.lt.s32.totalorder %s608_s29, %s430_s22 }
  0x25   : > { %p427_p6 = pnand %p425_p3, %p411_p5  ;;  %p433_p4 = scmp.lt.s32.totalorder %s431_s23, %s424_s16 }
  0x27   : > { %p428_p11 = pneg %p427_p6  ;;  %p434_p10 = por %p433_p4, %p432_p9 }
  0x29   : > { %p435_p12 = pnand %p434_p10, %p428_p11 }
  0x2b   : > { %438 = shalt.err (!%p435_p12)
}
  0x2c   : > { %349 = dma.hbm_to_vmem [thread:$0]  (!%p612_p0), %s606_s27, 256, %s608_s29, %s104_s2  }
  0x2d   : > { %p717_p1 = scmp.lt.s32.totalorder %s521_s11, 3  ;;  %p718_p2 = scmp.ge.s32.totalorder %s521_s11, 1 }
  0x2f   : > { %p123_p5 = pnand %p718_p2, %p717_p1 }
  0x30   : > { %s648_s24 = sand.u32 (!%p123_p5), 1, %s505_s7  }
  0x31   : > { %126 = sbr.rel (%p123_p5) target bundleno = 92 (0x5c), region = 24  ;;  %s332_s25 = sshll.u32 (!%p123_p5), %s648_s24, 4 }
  0x32   : > { %s129_s26 = scalar_lea.sflag (!%p123_p5), [#allocation3], %s648_s24  ;;  %s132_s28 = scalar_lea.vmem (!%p123_p5), [#allocation2], %s332_s25 }
  0x38   : > { %492 = dma.done.wait (%p584_p8), %s129_s26, 256  }
  0x39   : > { %494 = vsyncadd (%p584_p8), %s129_s26, 4294967040  ;;  %v162_v0 = vlaneseq  ;;  %v524_v1 = vmov 1983009808   ;;  %v525_v5 = vmov 1934713408   ;;  %s150_s18 = scalar_lea.vmem [#allocation5], %s332_s25 }
  0x3a   : > { %v160_v2 = vunpack.c.l.s4 %v524_v1  ;;  %v181_v6 = vunpack.c.l.s4 %v525_v5  ;;  %v406_v8 = vld [vmem:[%s132_s28] ss:$8 sps:$4 sm:$0xff]   ;;  %v408_v10 = vld [vmem:[%s132_s28 + $0x4] ss:$8 sps:$4 sm:$0xff]   ;;  %s240_s27 = sshll.u32 %s150_s18, 4  ;;  %s341_s29 = sshll.u32 %s513_s9, 8  ;;  %s657_s27 = int_to_ptr.vmem [resolvable:$true] %s240_s27 }
  0x3b   : > { %v163_v3 = vshrl.u32 %v162_v0, 7  ;;  %s662_s3 = scalar_lea.hbm %s710_s1, %s341_s29  ;;  %s224_s4 = scalar_lea.sflag [#allocation4], %s648_s24 }
  0x3c   : > { %v161_v4 = vunpack.c.0.s8 %v160_v2  ;;  %v182_v9 = vunpack.c.0.s8 %v181_v6  ;;  %s439_s5 = scalar_lea.vmem %s657_s27, 256  ;;  %p719_p9 = scmp.ne.s32.totalorder %s714_s19, 0 }
  0x3d   : > { %p440_p8 = scmp.ne.s32.totalorder %s657_s27, %s439_s5  ;;  %s526_s9 = smov [#allocation5]  }
  0x3e   : > { %v164_v7 = vsub.s32 %v161_v4, %v163_v3  ;;  %v185_v14 = vsub.s32 %v182_v9, %v163_v3  ;;  %s443_s12 = sshll.u32 %s526_s9, 4  ;;  %s444_s12 = int_to_ptr.vmem [resolvable:$false] %s443_s12 }
  0x3f   : > { %p441_p11 = pnand %p440_p8, %p719_p9  ;;  %s445_s13 = scalar_lea.vmem %s444_s12, 512 }
  0x40   : > { %v165_v11 = vrot.slane %v406_v8, %v164_v7  ;;  %v172_v12 = vrot.slane %v408_v10, %v164_v7  ;;  %p446_p7 = scmp.lt.s32.totalorder %s657_s27, %s444_s12  ;;  %p447_p13 = scmp.lt.s32.totalorder %s445_s13, %s439_s5 }
  0x41   : > { %p442_p0 = pneg %p441_p11 }
  0x42   : > { %v173_v13 = vcombine.high %v165_v11, %v165_v11  ;;  %v174_v15 = vcombine.high %v172_v12, %v172_v12  ;;  %p448_p3 = por %p447_p13, %p446_p7 }
  0x44   : > { %v179_v16 = vcombine.low %v165_v11, %v173_v13  ;;  %v188_v17 = vcombine.low %v172_v12, %v174_v15  ;;  %p449_p6 = pnand %p448_p3, %p442_p0 }
  0x46   : > { %v186_v18 = vrot.slane %v179_v16, %v185_v14  ;;  %v195_v19 = vrot.slane %v188_v17, %v185_v14 }
  0x48   : > { %v201_v20 = vcombine.low %v186_v18, %v195_v19  ;;  %v334_v21 = vcombine.high %v186_v18, %v195_v19 }
  0x4a   : > { %v209_v22 = vrot.slane %v201_v20, %v164_v7  ;;  %v216_v23 = vrot.slane %v334_v21, %v164_v7 }
  0x4c   : > { %v217_v24 = vcombine.low %v209_v22, %v216_v23  ;;  %v218_v25 = vcombine.high %v209_v22, %v216_v23 }
  0x4e   : > { %221 = vst [vmem:[%s150_s18] sm:$0xff] %v217_v24  ;;  %222 = vst [vmem:[%s150_s18 + $0x8] sm:$0xff] %v218_v25 }
  0x4f   : > { %452 = shalt.err (!%p449_p6)
}
  0x50   : > { %s453_s15 = scalar_lea.hbm %s662_s3, 256  ;;  %s457_s22 = scalar_lea.hbm %s710_s1, 512 }
  0x51   : > { %p454_p4 = scmp.ne.s32.totalorder %s662_s3, %s453_s15  ;;  %p458_p1 = scmp.lt.u32.totalorder %s662_s3, %s710_s1 }
  0x52   : > { %p459_p2 = scmp.lt.u32.totalorder %s457_s22, %s453_s15  ;;  %p461_p8 = scmp.lt.u32.totalorder %s453_s15, %s662_s3 }
  0x53   : > { %p455_p10 = pnand %p454_p4, %p719_p9 }
  0x54   : > { %p460_p5 = por %p459_p2, %p458_p1 }
  0x55   : > { %p456_p12 = pneg %p455_p10 }
  0x56   : > { %p462_p11 = por %p461_p8, %p460_p5 }
  0x58   : > { %p463_p0 = pnand %p462_p11, %p456_p12 }
  0x5a   : > { %466 = shalt.err (!%p463_p0)
}
  0x5b   : > { %344 = dma.vmem_to_hbm [thread:$0]  (%p719_p9), %s657_s27, 256, %s662_s3, %s224_s4  }
  0x5c PF: > { %s252_s25 = sand.u32 1, %s501_s6   ;;  %p720_p7 = scmp.ne.s32.totalorder %s715_s21, 0 }
  0x5d   : > { %p721_p13 = scmp.ge.s32.totalorder %s521_s11, 2  ;;  %s253_s26 = scalar_lea.sflag [#allocation4], %s252_s25 }
  0x5f   : > { %p351_p3 = pnand %p721_p13, %p720_p7 }
  0x61   : > { %496 = dma.done.wait (!%p351_p3), %s253_s26, 256  }
  0x62   : > { %498 = vsyncadd (!%p351_p3), %s253_s26, 4294967040  ;;  %s17_s11 = sadd.s32 1, %s521_s11   ;;  %s722_s6 = smov %s505_s7 }
  0x63   : > { %p14_p6 = scmp.ge.s32.totalorder %s17_s11, 4   ;;  %s723_s7 = smov %s509_s8 }
  0x64   : > { %s724_s8 = smov %s593_s20  ;;  %s725_s9 = smov %s517_s10 }
  0x65   : > { %s726_s10 = smov %s728_s14  ;;  %16 = sbr.rel (!%p14_p6) target bundleno = 6 (0x6), region = 69 }
  0x6c   :  { %258 = vsyncpa [#allocation3], 1 }
  0x6d   :  { %260 = vsyncpa [#allocation3 + $0x1], 1 }
  0x6e   :  { %261 = vsyncpa [#allocation4], 1 }
  0x6f   :  { %263 = vsyncpa [#allocation4 + $0x1], 1 }

</bundles_post_ra>
